<compile_context>
chip_gen: v7x
topology: tpu7x:2x2x1
jax: 0.10.0
libtpu: 0.0.40
codegen_flags: <defaults>
</compile_context>

<pallas_src>
import functools

import jax
import jax.numpy as jnp
from jax.experimental import pallas as pl
from jax.experimental.pallas import tpu as pltpu


def _pick_lane_tile(hw, requested, bytes_per_lane, max_bytes=4 << 20):
    """Lane (last-dim) tile: full extent when small, else a multiple of 128.

    Full-extent blocks are always legal (the (8,128) rule is waived for them);
    tiled blocks are 128-lane multiples.  `bytes_per_lane` is the per-lane cost
    of one (double-buffered) block, used to keep tiles inside the default
    scoped-VMEM limits on every TPU generation.
    """
    if requested is not None and requested >= hw:
        return hw
    if requested is None:
        if hw <= 1024:                # tiny map: one block, no grid overhead
            return hw
        tile = 512                    # >=512 lanes: ~85% of HBM roofline
    else:
        tile = max(128, (requested // 128) * 128)
    while tile > 128 and tile * bytes_per_lane > max_bytes:
        tile -= 128
    return tile


def _gap_kernel(x_ref, o_ref, acc_ref, *, hw, hw_tile, inv_hw, needs_mask):
    # x_ref:   (row_tile, hw_tile)  spatial slice, rows = N*Cin (sublane dense)
    # o_ref:   (row_tile, 1)        pooled mean (written on last reduction step)
    # acc_ref: (row_tile, 1) f32    running spatial sum (VMEM scratch)
    k = pl.program_id(1)

    @pl.when(k == 0)
    def _():
        acc_ref[...] = jnp.zeros_like(acc_ref)

    x = x_ref[...].astype(jnp.float32)
    if needs_mask:
        # Tail tile: lanes past HW hold undefined VMEM data; zero them so the
        # sum stays exact (cdiv-style tiling for HW not divisible by the tile).
        lane = jax.lax.broadcasted_iota(jnp.int32, (1, hw_tile), 1)
        x = jnp.where(lane < (hw - k * hw_tile), x, 0.0)
    # XLU reduce; the kernel is HBM-read-bound so this occupies a free slot.
    acc_ref[...] += jnp.sum(x, axis=-1, keepdims=True)

    @pl.when(k == pl.num_programs(1) - 1)
    def _():
        o_ref[...] = (acc_ref[...] * inv_hw).astype(o_ref.dtype)


def _proj_broadcast_kernel(p_ref, w_ref, b_ref, o_ref):
    # p_ref: (N, Cin) pooled mean
    # w_ref: (Cin, Cout) folded depthwise * pointwise * BN-scale weight
    # b_ref: (1, Cout)  folded BN shift
    # o_ref: (N, Cout, o_tile) lane-dense output tile (pipelined writeback)
    # The tiny matmul is recomputed per tile (negligible); the HW broadcast
    # write is the dominant byte stream and is what this kernel pipelines.
    h = jnp.dot(p_ref[...], w_ref[...],
                preferred_element_type=jnp.float32) + b_ref[...]
    h = jnp.maximum(h, 0.0)                                    # ReLU
    # bilinear upsample of a 1x1 map (align_corners=False) == broadcast
    o_ref[...] = jnp.broadcast_to(h[:, :, None], o_ref.shape).astype(o_ref.dtype)


def image_pool_forward(x, dw_weight, pw_weight, gamma, beta, run_mean, run_var,
                       *, hw_tile=None, out_tile=None, eps=1e-5):
    """x: (N, Cin, H, W); returns (N, Cout, H, W) in x.dtype."""
    N, C_in, H, W = x.shape
    C_out = pw_weight.shape[1]
    HW = H * W
    rows = N * C_in
    out_dtype = x.dtype

    # ---- Fold depthwise 1x1 conv + eval-mode BatchNorm into (w_eff, b_eff), f32.
    scale = gamma.astype(jnp.float32).reshape(1, C_out) * jax.lax.rsqrt(
        run_var.astype(jnp.float32).reshape(1, C_out) + eps)
    w_eff = (dw_weight.astype(jnp.float32).reshape(C_in, 1)
             * pw_weight.astype(jnp.float32)) * scale                # (Cin, Cout)
    b_eff = (beta.astype(jnp.float32).reshape(1, C_out)
             - run_mean.astype(jnp.float32).reshape(1, C_out) * scale)

    # ---- Phase A: tiled global average pool over HW (rows = N*Cin, sublane dense).
    x2 = x.reshape(rows, HW)                     # contiguous reshape, free
    itemsize = x2.dtype.itemsize

    r_hw_tile = _pick_lane_tile(HW, hw_tile, rows * itemsize)
    hw_blocks = pl.cdiv(HW, r_hw_tile)
    needs_mask = (HW % r_hw_tile) != 0

    # Bound the per-step input buffer (it is double-buffered by the pipeline).
    row_tile = rows
    while row_tile % 16 == 0 and row_tile * r_hw_tile * itemsize > (4 << 20):
        row_tile //= 2
    # Give v7x's two TensorCores independent row blocks when the array is big
    # enough for the extra grid steps to be worth it.
    if (row_tile == rows and row_tile % 16 == 0
            and rows * HW * itemsize > (1 << 20)):
        row_tile //= 2
    row_blocks = rows // row_tile

    gap = functools.partial(_gap_kernel, hw=HW, hw_tile=r_hw_tile,
                            inv_hw=1.0 / HW, needs_mask=needs_mask)
    pooled = pl.pallas_call(
        gap,
        out_shape=jax.ShapeDtypeStruct((rows, 1), jnp.float32),
        grid_spec=pltpu.PrefetchScalarGridSpec(
            num_scalar_prefetch=0,
            grid=(row_blocks, hw_blocks),
            in_specs=[pl.BlockSpec((row_tile, r_hw_tile), lambda r, k: (r, k))],
            out_specs=pl.BlockSpec((row_tile, 1), lambda r, k: (r, 0)),
            scratch_shapes=[pltpu.VMEM((row_tile, 1), jnp.float32)],
        ),
        compiler_params=pltpu.CompilerParams(
            dimension_semantics=("parallel", "arbitrary")),
    )(x2)
    pooled = pooled.reshape(N, C_in)             # N*Cin scalars, trivial

    # ---- Phase B: folded 1x1 convs + BN + ReLU, broadcast-write tiled over HW.
    o_tile = _pick_lane_tile(HW, out_tile, N * C_out * out_dtype.itemsize)
    o_blocks = pl.cdiv(HW, o_tile)

    out3 = pl.pallas_call(
        _proj_broadcast_kernel,
        out_shape=jax.ShapeDtypeStruct((N, C_out, HW), out_dtype),
        grid_spec=pltpu.PrefetchScalarGridSpec(
            num_scalar_prefetch=0,
            grid=(o_blocks,),
            in_specs=[
                pl.BlockSpec((N, C_in), lambda j: (0, 0)),
                pl.BlockSpec((C_in, C_out), lambda j: (0, 0)),
                pl.BlockSpec((1, C_out), lambda j: (0, 0)),
            ],
            out_specs=pl.BlockSpec((N, C_out, o_tile), lambda j: (0, 0, j)),
        ),
        compiler_params=pltpu.CompilerParams(
            dimension_semantics=("parallel",)),
    )(pooled, w_eff, b_eff)

    return out3.reshape(N, C_out, H, W)


def _reference(x, dw_weight, pw_weight, gamma, beta, run_mean, run_var, eps=1e-5):
    """Pure-JAX reference of the same forward pass (for correctness check)."""
    N, C_in, H, W = x.shape
    pooled = jnp.mean(x, axis=(2, 3))                     # AdaptiveAvgPool2d(1)
    pooled = pooled * dw_weight.reshape(1, C_in)          # depthwise 1x1 (groups=Cin)
    h = pooled @ pw_weight                                # pointwise 1x1
    h = ((h - run_mean.reshape(1, -1))
         * jax.lax.rsqrt(run_var.reshape(1, -1) + eps)
         * gamma.reshape(1, -1) + beta.reshape(1, -1))    # BN (eval)
    h = jnp.maximum(h, 0.0)                               # ReLU
    return jnp.broadcast_to(h[:, :, None, None], (N, pw_weight.shape[1], H, W))


if __name__ == "__main__":
    # Module config: in_ch=4, out_ch=8, atr_sep_conv=True
    N, C_in, C_out = 2, 4, 8

    key = jax.random.PRNGKey(0)
    k_x1, k_x2, k_dw, k_pw, k_g, k_b, k_m, k_v = jax.random.split(key, 8)

    # Shapes match the PyTorch module:
    #   conv1 (depthwise): (C_in, 1, 1, 1)      -> stored as (1, C_in)
    #   conv2 (pointwise): (C_out, C_in, 1, 1)  -> stored transposed as (C_in, C_out)
    #   bn: gamma, beta, running_mean, running_var: (C_out,) -> stored as (1, C_out)
    dw_weight = jax.random.normal(k_dw, (1, C_in), dtype=jnp.float32)
    pw_weight = jax.random.normal(k_pw, (C_in, C_out), dtype=jnp.float32)
    gamma = 1.0 + 0.1 * jax.random.normal(k_g, (1, C_out), dtype=jnp.float32)
    beta = 0.1 * jax.random.normal(k_b, (1, C_out), dtype=jnp.float32)
    run_mean = 0.1 * jax.random.normal(k_m, (1, C_out), dtype=jnp.float32)
    run_var = jnp.abs(jax.random.normal(k_v, (1, C_out), dtype=jnp.float32)) + 0.5

    ok = True

    # Case 1: 16x16 (HW=256), hw_tile/out_tile=128 -> exercises the pipelined
    # reduction accumulator and the multi-tile parallel broadcast write.
    x1 = jax.random.normal(k_x1, (N, C_in, 16, 16), dtype=jnp.float32)
    out1 = jax.block_until_ready(
        image_pool_forward(x1, dw_weight, pw_weight, gamma, beta,
                           run_mean, run_var, hw_tile=128, out_tile=128))
    ref1 = _reference(x1, dw_weight, pw_weight, gamma, beta, run_mean, run_var)
    ok &= out1.shape == (N, C_out, 16, 16)
    ok &= bool(jnp.allclose(out1, ref1, atol=1e-5, rtol=1e-5))

    # Case 2: 17x17 (HW=289, not a multiple of 128) -> exercises the masked
    # tail tile in the reduction and the partial boundary block in the write.
    x2 = jax.random.normal(k_x2, (N, C_in, 17, 17), dtype=jnp.float32)
    out2 = jax.block_until_ready(
        image_pool_forward(x2, dw_weight, pw_weight, gamma, beta,
                           run_mean, run_var, hw_tile=128, out_tile=128))
    ref2 = _reference(x2, dw_weight, pw_weight, gamma, beta, run_mean, run_var)
    ok &= out2.shape == (N, C_out, 17, 17)
    ok &= bool(jnp.allclose(out2, ref2, atol=1e-5, rtol=1e-5))

    # TODO(synk): BatchNorm implemented with eval-mode (running-stats) semantics;
    # training-mode batch statistics over a 1x1 spatial map are not reproduced.
    assert ok
    print("KERNEL_OK")
</pallas_src>

<mosaic_0001>
module attributes {stable_mosaic.version = 11 : i64} {
  func.func @_gap_kernel(%arg0: i32, %arg1: i32, %arg2: memref<8x128xf32, #tpu.memory_space<vmem>>, %arg3: memref<8x1xf32, #tpu.memory_space<vmem>>, %arg4: memref<8x1xf32, #tpu.memory_space<vmem>>) attributes {dimension_semantics = [#tpu.dimension_semantics<parallel>, #tpu.dimension_semantics<arbitrary>], iteration_bounds = array<i64: 1, 2>, scalar_prefetch = 0 : i64, scratch_operands = 1 : i64, tpu.core_type = #tpu.core_type<tc>, window_params = [{transform_indices = @transform_0, window_bounds = array<i64: 8, 128>}, {transform_indices = @transform_1, window_bounds = array<i64: 8, 1>}]} {
    %c0_i32 = arith.constant 0 : i32
    %0 = arith.cmpi eq, %arg1, %c0_i32 : i32
    %1 = arith.extui %0 : i1 to i32
    %c0_i32_0 = arith.constant 0 : i32
    %2 = arith.cmpi ne, %1, %c0_i32_0 : i32
    scf.if %2 {
      %cst_7 = arith.constant 0.000000e+00 : f32
      %12 = vector.broadcast %cst_7 : f32 to vector<8x1xf32>
      %c0_8 = arith.constant 0 : index
      %c0_9 = arith.constant 0 : index
      %13 = vector.load %arg4[%c0_8, %c0_9] : memref<8x1xf32, #tpu.memory_space<vmem>>, vector<8x1xf32>
      tpu.vector_store %arg4[%c0_8, %c0_9], %12 {strides = array<i32>} : memref<8x1xf32, #tpu.memory_space<vmem>>, vector<8x1xf32>,
    } else {
    }
    %c0 = arith.constant 0 : index
    %c0_1 = arith.constant 0 : index
    %3 = vector.load %arg2[%c0, %c0_1] : memref<8x128xf32, #tpu.memory_space<vmem>>, vector<8x128xf32>
    %c0_2 = arith.constant 0 : index
    %c0_3 = arith.constant 0 : index
    %4 = vector.load %arg4[%c0_2, %c0_3] : memref<8x1xf32, #tpu.memory_space<vmem>>, vector<8x1xf32>
    %cst = arith.constant dense<0.000000e+00> : vector<8xf32>
    %5 = vector.multi_reduction <add>, %3, %cst [1] : vector<8x128xf32> to vector<8xf32>
    %6 = vector.shape_cast %5 : vector<8xf32> to vector<8x1xf32>
    %7 = arith.addf %4, %6 : vector<8x1xf32>
    %c0_4 = arith.constant 0 : index
    %c0_5 = arith.constant 0 : index
    %8 = vector.load %arg4[%c0_4, %c0_5] : memref<8x1xf32, #tpu.memory_space<vmem>>, vector<8x1xf32>
    tpu.vector_store %arg4[%c0_4, %c0_5], %7 {strides = array<i32>} : memref<8x1xf32, #tpu.memory_space<vmem>>, vector<8x1xf32>,
    %c1_i32 = arith.constant 1 : i32
    %9 = arith.cmpi eq, %arg1, %c1_i32 : i32
    %10 = arith.extui %9 : i1 to i32
    %c0_i32_6 = arith.constant 0 : i32
    %11 = arith.cmpi ne, %10, %c0_i32_6 : i32
    scf.if %11 {
      %c0_7 = arith.constant 0 : index
      %c0_8 = arith.constant 0 : index
      %12 = vector.load %arg4[%c0_7, %c0_8] : memref<8x1xf32, #tpu.memory_space<vmem>>, vector<8x1xf32>
      %cst_9 = arith.constant 3.906250e-03 : f32
      %13 = vector.broadcast %cst_9 : f32 to vector<8x1xf32>
      %14 = arith.mulf %12, %13 : vector<8x1xf32>
      %c0_10 = arith.constant 0 : index
      %c0_11 = arith.constant 0 : index
      %15 = vector.load %arg3[%c0_10, %c0_11] : memref<8x1xf32, #tpu.memory_space<vmem>>, vector<8x1xf32>
      tpu.vector_store %arg3[%c0_10, %c0_11], %14 {strides = array<i32>} : memref<8x1xf32, #tpu.memory_space<vmem>>, vector<8x1xf32>,
    } else {
    }
    return
  }
  func.func @transform_0(%arg0: i32, %arg1: i32) -> (i32, i32) {
    %c0_i32 = arith.constant 0 : i32
    return %arg0, %arg1 : i32, i32
  }
  func.func @transform_1(%arg0: i32, %arg1: i32) -> (i32, i32) {
    %c0_i32 = arith.constant 0 : i32
    %c0_i32_0 = arith.constant 0 : i32
    return %arg0, %c0_i32 : i32, i32
  }
}

</mosaic_0001>

<bundles_post_ra>
// kernel: tpu_custom_call.1
= control target key start
LH: loop header
LB: loop body
LE: loop exit
PB: predicated region body
PF: predicated region fallthrough
CT: control target
= control target key end

     0   :  { %6 = vsyncpa [#allocation4], 0  ;;  %s527_s0 = inlined_call_operand.hbm [shape: f32[8,256], index: 0, kind: input, shape index: {}]   ;;  %s528_s1 = inlined_call_operand.vmem [shape: f32[8,1], index: 1, kind: output, shape index: {}]  }
   0x1   :  { %8 = vsyncpa [#allocation4 + $0x1], 0  ;;  %s402_s6 = smov 0   ;;  %s404_s7 = smov 0  }
   0x2   :  { %s406_s8 = smov 0   ;;  %s408_s9 = smov 0  }
   0x3   :  { %s410_s10 = smov 0   ;;  %s412_s11 = smov 0  }
   0x4 LB: > { %s240_s12 = sadd.s32 4294967295, %s388_s11   ;;  %s23_s13 = sadd.s32 1, %s384_s10  ;;  %s388_s11 = sphi %s412_s11, %s14_s11   ;;  %s384_s10 = sphi %s410_s10, %s538_s10   ;;  %s380_s9 = sphi %s408_s9, %s537_s9   ;;  %s376_s8 = sphi %s406_s8, %s536_s8   ;;  %s372_s7 = sphi %s404_s7, %s535_s7   ;;  %s368_s6 = sphi %s402_s6, %s534_s6  }
   0x5   : > { %p24_p0 = scmp.ge.s32.totalorder %s23_s13, 2  ;;  %s35_s14 = sadd.s32 1, %s376_s8 }
   0x6   : > { %p42_p1 = scmp.ne.s32.totalorder %s376_s8, %s372_s7  ;;  %p43_p2 = scmp.eq.s32.totalorder %s388_s11, 0 }
   0x7   : > { %s540_s13 = smov (%p24_p0, %s23_s13), 0  ;;  %p48_p4 = scmp.ne.s32.totalorder %s372_s7, %s368_s6 }
   0x8   : > { %p438_p3 = por %p43_p2, %p42_p1  ;;  %s31_s16 = ssub.s32 %s384_s10, %s540_s13 }
   0x9   : > { %p49_p5 = scmp.eq.s32.totalorder %s240_s12, 0  ;;  %p33_p6 = scmp.eq.s32.totalorder %s31_s16, 0 }
   0xa   : > { %p258_p8 = scmp.lt.s32.totalorder %s388_s11, 2  ;;  %s98_s19 = sand.u32 1, %s376_s8  }
   0xb   : > { %p445_p7 = por %p49_p5, %p48_p4  ;;  %s244_s20 = sshll.u32 %s384_s10, 7 }
   0xc   : > { %s451_s18 = scalar_select %p33_p6, %s376_s8, %s35_s14  }
   0xd   : > { %s243_s21 = sshll.u32 %s98_s19, 3  ;;  %s458_s24 = scalar_lea.hbm %s527_s0, %s244_s20 }
   0xe   : > { %s102_s25 = scalar_lea.vmem [#allocation3], %s243_s21  ;;  %p462_p9 = pnand %p258_p8, %p438_p3 }
   0xf   : > { %s111_s26 = sshll.u32 %s102_s25, 4  ;;  %s99_s28 = scalar_lea.sflag [#allocation4], %s98_s19  ;;  %s466_s26 = int_to_ptr.vmem [resolvable:$true] %s111_s26 }
  0x10   : > { %s308_s29 = scalar_lea.hbm %s458_s24, 128  ;;  %p310_p13 = pneg %p462_p9 }
  0x11   : > { %p309_p12 = scmp.ne.s32.totalorder %s458_s24, %s308_s29  ;;  %s313_s3 = scalar_lea.hbm %s527_s0, 256 }
  0x12   : > { %p314_p2 = scmp.lt.u32.totalorder %s458_s24, %s527_s0  ;;  %p315_p3 = scmp.lt.u32.totalorder %s313_s3, %s308_s29 }
  0x13   : > { %p311_p0 = pnand %p310_p13, %p309_p12  ;;  %p317_p5 = scmp.lt.u32.totalorder %s308_s29, %s458_s24 }
  0x14   : > { %p316_p4 = por %p315_p3, %p314_p2 }
  0x15   : > { %p312_p1 = pneg %p311_p0 }
  0x16   : > { %p318_p6 = por %p317_p5, %p316_p4 }
  0x18   : > { %p319_p8 = pnand %p318_p6, %p312_p1 }
  0x1a   : > { %322 = shalt.err (!%p319_p8)
}
  0x1b   : > { %s323_s6 = scalar_lea.vmem %s466_s26, 128  ;;  %s390_s12 = smov [#allocation3]  }
  0x1c   : > { %p324_p12 = scmp.ne.s32.totalorder %s466_s26, %s323_s6  ;;  %s328_s14 = sshll.u32 %s390_s12, 4  ;;  %s329_s14 = int_to_ptr.vmem [resolvable:$false] %s328_s14 }
  0x1d   : > { %s330_s15 = scalar_lea.vmem %s329_s14, 256  ;;  %p331_p11 = scmp.lt.s32.totalorder %s466_s26, %s329_s14 }
  0x1e   : > { %p326_p0 = pnand %p324_p12, %p310_p13  ;;  %p332_p2 = scmp.lt.s32.totalorder %s330_s15, %s323_s6 }
  0x20   : > { %p327_p10 = pneg %p326_p0  ;;  %p333_p3 = por %p332_p2, %p331_p11 }
  0x22   : > { %p334_p4 = pnand %p333_p3, %p327_p10 }
  0x24   : > { %337 = shalt.err (!%p334_p4)
}
  0x25   : > { %257 = dma.hbm_to_vmem [thread:$0]  (!%p462_p9), %s458_s24, 128, %s466_s26, %s99_s28  }
  0x26   : > { %p532_p1 = scmp.lt.s32.totalorder %s388_s11, 3  ;;  %p533_p5 = scmp.ge.s32.totalorder %s388_s11, 1 }
  0x28   : > { %p117_p13 = pnand %p533_p5, %p532_p1 }
  0x29   : > { %s122_s16 = sand.u32 (!%p117_p13), 1, %s372_s7  }
  0x2a   : > { %120 = sbr.rel (%p117_p13) target bundleno = 215 (0xd7), region = 24  ;;  %s246_s19 = sshll.u32 (!%p117_p13), %s122_s16, 3 }
  0x2b   : > { %s123_s20 = scalar_lea.sflag (!%p117_p13), [#allocation4], %s122_s16  ;;  %s126_s21 = scalar_lea.vmem (!%p117_p13), [#allocation3], %s246_s19 }
  0x31   : > { %363 = dma.done.wait (%p445_p7), %s123_s20, 128  }
  0x32   : > { %365 = vsyncadd (%p445_p7), %s123_s20, 4294967168  ;;  %p247_p10 = scmp.ne.s32.totalorder %s380_s9, 0 }
  0x33   : > { %vm152_vm0 = vcmask (!%p247_p10), 7168   ;;  %v391_v0 = vmov (!%p247_p10), 0.0  }
  0x34   : > { %151 = sbr.rel (%p247_p10) target bundleno = 59 (0x3b), region = 32  ;;  %153 = vst.msk [vmem:[#allocation2] sm:$0xff] (!%p247_p10), %vm152_vm0, %v391_v0 }
  0x3b PF: > { %v154_v1 = vld [vmem:[%s126_s21] sm:$0xff]  ;;  %v155_v2 = vld [vmem:[#allocation2] sm:$0xff]  ;;  %vm159_vm1 = vcmask 7168   ;;  %p248_p9 = scmp.ne.s32.totalorder %s380_s9, 1 }
  0x3c   : > { %156 = vadd.xlane.f32.xlu0 %v154_v1 }
  0xc6   : > { %164 = sbr.rel (%p248_p9) target bundleno = 215 (0xd7), region = 36 }
  0xc9   : > { %v157_v3 = vpop.xlane.xlu0 %156 }
  0xca   : > { %v158_v4 = vadd.f32 %v157_v3, %v155_v2 }
  0xcc   : > { %160 = vst.msk [vmem:[#allocation2] sm:$0xff] %vm159_vm1, %v158_v4 }
  0xd3   : > { %v165_v5 = vld [vmem:[#allocation2] sm:$0xff] }
  0xd4   : > { %v166_v6 = vmul.f32 0.00390625, %v165_v5 }
  0xd6   : > { %167 = vst.msk [vmem:[%s528_s1] sm:$0xff] %vm159_vm1, %v166_v6 }
  0xd7 PF: > { %s14_s11 = sadd.s32 1, %s388_s11   ;;  %s534_s6 = smov %s372_s7 }
  0xd8   : > { %p11_p7 = scmp.ge.s32.totalorder %s14_s11, 4   ;;  %s535_s7 = smov %s376_s8 }
  0xd9   : > { %s536_s8 = smov %s451_s18  ;;  %s537_s9 = smov %s384_s10 }
  0xda   : > { %s538_s10 = smov %s540_s13  ;;  %13 = sbr.rel (!%p11_p7) target bundleno = 4 (0x4), region = 72 }
  0xe1   :  { %187 = vsyncpa [#allocation4], 1 }
  0xe2   :  { %189 = vsyncpa [#allocation4 + $0x1], 1 }

</bundles_post_ra>
